<compile_context>
chip_gen: v7x
topology: tpu7x:2x2x1
jax: 0.10.0
libtpu: 0.0.40
codegen_flags: <defaults>
</compile_context>

<pallas_src>
import functools

import jax
import jax.numpy as jnp
from jax.experimental import pallas as pl
from jax.experimental.pallas import tpu as pltpu


def _round_up(a, m):
    return ((a + m - 1) // m) * m


def mlp_kernel(x_ref, w1t_ref, b1_ref, w2t_ref, b2_ref, w3_ref, b3_ref, o_ref):
    x = x_ref[...]                                           # [TB, D]  batch-major

    # Layer 1: h^T = relu(W1^T @ x^T + b1). "NT" contraction (last dim of both
    # operands) -> the MXU consumes x^T directly and the result lands with the
    # batch on the lane axis (fully lane-dense from here on).
    ht = jax.lax.dot_general(
        w1t_ref[...], x,
        dimension_numbers=(((1,), (1,)), ((), ())),
        preferred_element_type=jnp.float32)                  # [64, TB]
    ht = jnp.maximum(ht + b1_ref[...], 0.0)

    # Layer 2: eval-mode BatchNorm already folded into w2t/b2; Dropout = identity.
    h2t = jnp.dot(w2t_ref[...], ht, preferred_element_type=jnp.float32)  # [32, TB]
    h2t = jnp.maximum(h2t + b2_ref[...], 0.0)

    # Layer 3: lane-dense [1, TB] output produced directly (no relayout, no
    # masked lane-1 stores).
    out = jnp.dot(w3_ref[...], h2t, preferred_element_type=jnp.float32)  # [1, TB]
    o_ref[...] = out + b3_ref[...]


def _prepare_params(params, eps=1e-5):
    """Fold eval-mode BatchNorm1d into the second Linear (exact: ReLU precedes
    BN, Dropout is identity in eval) and pre-transpose for batch-on-lanes."""
    w1, b1, gamma, beta, mean, var, w2, b2, w3, b3 = params
    s = gamma * jax.lax.rsqrt(var + eps)                 # [1, 64]
    w2f = w2 * s.reshape(-1, 1)                          # [64, 32]
    b2f = b2 + (beta - mean * s) @ w2                    # [1, 32]
    return (w1.T,                 # [64, D]   W1^T
            b1.reshape(-1, 1),    # [64, 1]
            w2f.T,                # [32, 64]  W2f^T (BN folded)
            b2f.reshape(-1, 1),   # [32, 1]
            w3.reshape(1, -1),    # [1, 32]   w3 as a row
            b3.reshape(1, 1))     # [1, 1]


@functools.partial(jax.jit, static_argnames=("block_b",))
def mlp_forward(x, params, *, block_b=16384):
    """x: [B, input_dim] float32. Returns [B] (the module's .squeeze())."""
    B, D = x.shape
    w1t, b1c, w2t, b2c, w3r, b3c = _prepare_params(params)
    H1, H2 = w1t.shape[0], w2t.shape[0]                  # 64, 32

    # Round the batch only to the 128-lane boundary (zero-copy when B % 128 == 0).
    # A ragged last tile (Bp % TB != 0) is handled by Pallas boundary clipping,
    # so x is never padded/copied to a multiple of the (large) batch tile.
    Bp = _round_up(B, 128)
    if Bp != B:
        x = jnp.pad(x, ((0, Bp - B), (0, 0)))            # only when B not 128-aligned

    # Batch tile: >= 2 MiB of x per grid step amortizes the ~0.35us/step pipeline
    # overhead. VMEM @ TB=16384 (f32): x 2x8 MiB (lane-padded [TB,32]) + h^T 4 MiB
    # + h2^T 2 MiB + out 2x64 KiB ~= 30 MiB < 48 MiB scoped limit < 64 MiB (v7x).
    #   v7x/v6e: block_b=16384 (default); v5e: block_b=8192 if VMEM-pressured.
    TB = min(_round_up(block_b, 128), Bp)
    grid = (pl.cdiv(Bp, TB),)

    in_specs = [
        pl.BlockSpec((TB, D), lambda i: (i, 0)),         # x: streamed over batch
        pl.BlockSpec((H1, D), lambda i: (0, 0)),         # W1^T   (VMEM-resident)
        pl.BlockSpec((H1, 1), lambda i: (0, 0)),         # b1
        pl.BlockSpec((H2, H1), lambda i: (0, 0)),        # W2f^T  (BN folded)
        pl.BlockSpec((H2, 1), lambda i: (0, 0)),         # b2f
        pl.BlockSpec((1, H2), lambda i: (0, 0)),         # w3 row
        pl.BlockSpec((1, 1), lambda i: (0, 0)),          # b3
    ]

    flops = 2 * Bp * (D * H1 + H1 * H2 + H2)
    bytes_accessed = 4 * (Bp * D + Bp + H1 * D + H1 + H2 * H1 + 2 * H2 + 1)

    out = pl.pallas_call(
        mlp_kernel,
        grid=grid,
        in_specs=in_specs,
        out_specs=pl.BlockSpec((1, TB), lambda i: (0, i)),   # lane-dense output
        out_shape=jax.ShapeDtypeStruct((1, Bp), jnp.float32),
        compiler_params=pltpu.CompilerParams(
            dimension_semantics=("parallel",),               # 2 TCs on v7x
            vmem_limit_bytes=48 * 1024 * 1024),
        cost_estimate=pl.CostEstimate(
            flops=flops, transcendentals=0, bytes_accessed=bytes_accessed),
    )(x, w1t, b1c, w2t, b2c, w3r, b3c)

    # PyTorch `.squeeze()`: [B, 1] -> [B]. (For B == 1 PyTorch yields a 0-d
    # tensor; here we keep shape (1,).)
    return out[0, :B]


def init_params(input_dim, key):
    """Deterministic parameter init mimicking the module's shapes."""
    k1, k2, k3 = jax.random.split(key, 3)

    def linear_init(k, fan_in, fan_out):
        bound = 1.0 / jnp.sqrt(fan_in)
        kw, kb = jax.random.split(k)
        w = jax.random.uniform(kw, (fan_in, fan_out), jnp.float32, -bound, bound)
        b = jax.random.uniform(kb, (1, fan_out), jnp.float32, -bound, bound)
        return w, b

    w1, b1 = linear_init(k1, input_dim, 64)
    w2, b2 = linear_init(k2, 64, 32)
    w3, b3 = linear_init(k3, 32, 1)

    gamma = jnp.ones((1, 64), jnp.float32)        # BatchNorm1d weight
    beta = jnp.zeros((1, 64), jnp.float32)        # BatchNorm1d bias
    running_mean = jnp.zeros((1, 64), jnp.float32)
    running_var = jnp.ones((1, 64), jnp.float32)

    return (w1, b1, gamma, beta, running_mean, running_var, w2, b2, w3, b3)


def mlp_reference(x, params, eps=1e-5):
    """Pure-JAX reference (eval-mode semantics) for a sanity check."""
    w1, b1, gamma, beta, mean, var, w2, b2, w3, b3 = params
    h = jnp.maximum(x @ w1 + b1, 0.0)
    h = (h - mean) * jax.lax.rsqrt(var + eps) * gamma + beta
    h = jnp.maximum(h @ w2 + b2, 0.0)
    return (h @ w3 + b3)[:, 0]


if __name__ == "__main__":
    key = jax.random.PRNGKey(0)
    kx, kp, kx2 = jax.random.split(key, 3)

    B, input_dim = 8, 32
    x = jax.random.normal(kx, (B, input_dim), jnp.float32)
    params = init_params(input_dim, kp)

    # Small case (single tile, padded batch).
    y = mlp_forward(x, params)
    jax.block_until_ready(y)
    assert y.shape == (B,), y.shape
    y_ref = mlp_reference(x, params)
    assert jnp.allclose(y, y_ref, atol=2e-2, rtol=2e-2), (y, y_ref)

    # Multi-tile case exercising the ragged last tile (Bp=384, TB=256 -> 2 tiles).
    B2 = 300
    x2 = jax.random.normal(kx2, (B2, input_dim), jnp.float32)
    y2 = mlp_forward(x2, params, block_b=256)
    jax.block_until_ready(y2)
    assert y2.shape == (B2,), y2.shape
    y2_ref = mlp_reference(x2, params)
    assert jnp.allclose(y2, y2_ref, atol=2e-2, rtol=2e-2)

    print("KERNEL_OK")
</pallas_src>

<mosaic_0001>
module attributes {stable_mosaic.version = 11 : i64} {
  func.func @mlp_kernel(%arg0: i32, %arg1: memref<128x32xf32, #tpu.memory_space<vmem>>, %arg2: memref<64x32xf32, #tpu.memory_space<vmem>>, %arg3: memref<64x1xf32, #tpu.memory_space<vmem>>, %arg4: memref<32x64xf32, #tpu.memory_space<vmem>>, %arg5: memref<32x1xf32, #tpu.memory_space<vmem>>, %arg6: memref<1x32xf32, #tpu.memory_space<vmem>>, %arg7: memref<1x1xf32, #tpu.memory_space<vmem>>, %arg8: memref<1x128xf32, #tpu.memory_space<vmem>>) attributes {dimension_semantics = [#tpu.dimension_semantics<parallel>], iteration_bounds = array<i64: 1>, scalar_prefetch = 0 : i64, scratch_operands = 0 : i64, tpu.core_type = #tpu.core_type<tc>, window_params = [{transform_indices = @transform_0, window_bounds = array<i64: 128, 32>}, {pipeline_mode = #tpu.pipeline_mode<synchronous>, transform_indices = @transform_1, window_bounds = array<i64: 64, 32>}, {pipeline_mode = #tpu.pipeline_mode<synchronous>, transform_indices = @transform_2, window_bounds = array<i64: 64, 1>}, {pipeline_mode = #tpu.pipeline_mode<synchronous>, transform_indices = @transform_3, window_bounds = array<i64: 32, 64>}, {pipeline_mode = #tpu.pipeline_mode<synchronous>, transform_indices = @transform_4, window_bounds = array<i64: 32, 1>}, {pipeline_mode = #tpu.pipeline_mode<synchronous>, transform_indices = @transform_5, window_bounds = array<i64: 1, 32>}, {pipeline_mode = #tpu.pipeline_mode<synchronous>, transform_indices = @transform_6, window_bounds = array<i64: 1, 1>}, {transform_indices = @transform_7, window_bounds = array<i64: 1, 128>}]} {
    %c0 = arith.constant 0 : index
    %c0_0 = arith.constant 0 : index
    %0 = vector.load %arg1[%c0, %c0_0] : memref<128x32xf32, #tpu.memory_space<vmem>>, vector<128x32xf32>
    %c0_1 = arith.constant 0 : index
    %c0_2 = arith.constant 0 : index
    %1 = vector.load %arg2[%c0_1, %c0_2] : memref<64x32xf32, #tpu.memory_space<vmem>>, vector<64x32xf32>
    %cst = arith.constant dense<0.000000e+00> : vector<64x128xf32>
    %2 = tpu.matmul %1, %0, %cst {dimension_numbers = #tpu.dot_dimension_numbers<[1], [1], [0], [0], [0, 0, 1, 0], [], []>} : vector<64x32xf32>, vector<128x32xf32>, vector<64x128xf32> -> vector<64x128xf32>
    %c0_3 = arith.constant 0 : index
    %c0_4 = arith.constant 0 : index
    %3 = vector.load %arg3[%c0_3, %c0_4] : memref<64x1xf32, #tpu.memory_space<vmem>>, vector<64x1xf32>
    %4 = vector.broadcast %3 : vector<64x1xf32> to vector<64x128xf32>
    %5 = arith.addf %2, %4 : vector<64x128xf32>
    %cst_5 = arith.constant 0.000000e+00 : f32
    %6 = vector.broadcast %cst_5 : f32 to vector<64x128xf32>
    %7 = arith.maximumf %5, %6 : vector<64x128xf32>
    %c0_6 = arith.constant 0 : index
    %c0_7 = arith.constant 0 : index
    %8 = vector.load %arg4[%c0_6, %c0_7] : memref<32x64xf32, #tpu.memory_space<vmem>>, vector<32x64xf32>
    %cst_8 = arith.constant dense<0.000000e+00> : vector<32x128xf32>
    %9 = tpu.matmul %8, %7, %cst_8 {dimension_numbers = #tpu.dot_dimension_numbers<[1], [0], [0], [1], [0, 0, 1, 1], [], []>} : vector<32x64xf32>, vector<64x128xf32>, vector<32x128xf32> -> vector<32x128xf32>
    %c0_9 = arith.constant 0 : index
    %c0_10 = arith.constant 0 : index
    %10 = vector.load %arg5[%c0_9, %c0_10] : memref<32x1xf32, #tpu.memory_space<vmem>>, vector<32x1xf32>
    %11 = vector.broadcast %10 : vector<32x1xf32> to vector<32x128xf32>
    %12 = arith.addf %9, %11 : vector<32x128xf32>
    %cst_11 = arith.constant 0.000000e+00 : f32
    %13 = vector.broadcast %cst_11 : f32 to vector<32x128xf32>
    %14 = arith.maximumf %12, %13 : vector<32x128xf32>
    %c0_12 = arith.constant 0 : index
    %c0_13 = arith.constant 0 : index
    %15 = vector.load %arg6[%c0_12, %c0_13] : memref<1x32xf32, #tpu.memory_space<vmem>>, vector<1x32xf32>
    %cst_14 = arith.constant dense<0.000000e+00> : vector<1x128xf32>
    %16 = tpu.matmul %15, %14, %cst_14 {dimension_numbers = #tpu.dot_dimension_numbers<[1], [0], [0], [1], [0, 0, 1, 1], [], []>} : vector<1x32xf32>, vector<32x128xf32>, vector<1x128xf32> -> vector<1x128xf32>
    %c0_15 = arith.constant 0 : index
    %c0_16 = arith.constant 0 : index
    %17 = vector.load %arg7[%c0_15, %c0_16] : memref<1x1xf32, #tpu.memory_space<vmem>>, vector<1x1xf32>
    %18 = vector.broadcast %17 : vector<1x1xf32> to vector<1x128xf32>
    %19 = arith.addf %16, %18 : vector<1x128xf32>
    %c0_17 = arith.constant 0 : index
    %c0_18 = arith.constant 0 : index
    %20 = vector.load %arg8[%c0_17, %c0_18] : memref<1x128xf32, #tpu.memory_space<vmem>>, vector<1x128xf32>
    tpu.vector_store %arg8[%c0_17, %c0_18], %19 {strides = array<i32>} : memref<1x128xf32, #tpu.memory_space<vmem>>, vector<1x128xf32>,
    return
  }
  func.func @transform_0(%arg0: i32) -> (i32, i32) {
    %c0_i32 = arith.constant 0 : i32
    %c0_i32_0 = arith.constant 0 : i32
    return %arg0, %c0_i32 : i32, i32
  }
  func.func @transform_1(%arg0: i32) -> (i32, i32) {
    %c0_i32 = arith.constant 0 : i32
    %c0_i32_0 = arith.constant 0 : i32
    %c0_i32_1 = arith.constant 0 : i32
    return %c0_i32, %c0_i32_0 : i32, i32
  }
  func.func @transform_2(%arg0: i32) -> (i32, i32) {
    %c0_i32 = arith.constant 0 : i32
    %c0_i32_0 = arith.constant 0 : i32
    %c0_i32_1 = arith.constant 0 : i32
    return %c0_i32, %c0_i32_0 : i32, i32
  }
  func.func @transform_3(%arg0: i32) -> (i32, i32) {
    %c0_i32 = arith.constant 0 : i32
    %c0_i32_0 = arith.constant 0 : i32
    %c0_i32_1 = arith.constant 0 : i32
    return %c0_i32, %c0_i32_0 : i32, i32
  }
  func.func @transform_4(%arg0: i32) -> (i32, i32) {
    %c0_i32 = arith.constant 0 : i32
    %c0_i32_0 = arith.constant 0 : i32
    %c0_i32_1 = arith.constant 0 : i32
    return %c0_i32, %c0_i32_0 : i32, i32
  }
  func.func @transform_5(%arg0: i32) -> (i32, i32) {
    %c0_i32 = arith.constant 0 : i32
    %c0_i32_0 = arith.constant 0 : i32
    %c0_i32_1 = arith.constant 0 : i32
    return %c0_i32, %c0_i32_0 : i32, i32
  }
  func.func @transform_6(%arg0: i32) -> (i32, i32) {
    %c0_i32 = arith.constant 0 : i32
    %c0_i32_0 = arith.constant 0 : i32
    %c0_i32_1 = arith.constant 0 : i32
    return %c0_i32, %c0_i32_0 : i32, i32
  }
  func.func @transform_7(%arg0: i32) -> (i32, i32) {
    %c0_i32 = arith.constant 0 : i32
    %c0_i32_0 = arith.constant 0 : i32
    return %c0_i32, %arg0 : i32, i32
  }
}

</mosaic_0001>

<bundles_post_ra>
// kernel: mlp_forward.1
= control target key start
LH: loop header
LB: loop body
LE: loop exit
PB: predicated region body
PF: predicated region fallthrough
CT: control target
= control target key end

     0   :  { %vm100_vm0 = vcmask 261120   ;;  %v728_v3 = vmov 0   ;;  %vm314_vm2 = vcmask 523264   ;;  %vm730_vm3 = vmmov 0   ;;  %s952_s0 = inlined_call_operand.vmem [shape: f32[128,32], index: 0, kind: input, shape index: {}]   ;;  %s953_s6 = inlined_call_operand.<no memory space> [shape: f32[1,1], index: 6, kind: input, shape index: {}]   ;;  %s954_s1 = inlined_call_operand.vmem [shape: f32[64,32], index: 1, kind: input, shape index: {}]   ;;  %s955_s2 = inlined_call_operand.vmem [shape: f32[64,1], index: 2, kind: input, shape index: {}]   ;;  %s956_s4 = inlined_call_operand.vmem [shape: f32[32,1], index: 4, kind: input, shape index: {}]   ;;  %s957_s3 = inlined_call_operand.vmem [shape: f32[32,64], index: 3, kind: input, shape index: {}]   ;;  %s958_s5 = inlined_call_operand.vmem [shape: f32[1,32], index: 5, kind: input, shape index: {}]   ;;  %s959_s7 = inlined_call_operand.vmem [shape: f32[1,128], index: 7, kind: output, shape index: {}]  }
   0x1   :  { %v28_v0 = vld [vmem:[%s952_s0] sm:$0xff]  ;;  %v29_v1 = vld [vmem:[%s952_s0 + $0x8] sm:$0xff]  ;;  %vm780_vm1 = vmpackc.low %vm100_vm0, %vm100_vm0  ;;  %726 = vset.pattern.permute.xlu0 %v728_v3  ;;  %727 = vset.pattern.permute.xlu1 %v728_v3  ;;  %v12_v4 = vstv %s953_s6 }
   0x2   :  { %v652_v5 = vpack.c.bf16 %v29_v1, %v28_v0  ;;  %v30_v6 = vld [vmem:[%s952_s0 + $0x10] sm:$0xff]  ;;  %v31_v7 = vld [vmem:[%s952_s0 + $0x18] sm:$0xff]  ;;  %13 = vst [vmem:[#allocation2] sm:$0x1] %v12_v4  ;;  %v44_v9 = vld [vmem:[%s954_s1] sm:$0xff] }
   0x3   :  { %v658_v8 = vpack.c.bf16 %v31_v7, %v30_v6  ;;  %v32_v10 = vld [vmem:[%s952_s0 + $0x20] sm:$0xff]  ;;  %v33_v11 = vld [vmem:[%s952_s0 + $0x28] sm:$0xff]  ;;  %607 = vmatprep.mubr.msk.f32.mxu0 %vm100_vm0, %v44_v9  ;;  %v54_v14 = vld [vmem:[%s955_s2 + $0x10] sm:$0xff] }
   0x4   :  { %654 = vmatprep.subr.msk.bf16.mxu0 %vm780_vm1, %v652_v5  ;;  %v52_v12 = vld [vmem:[%s955_s2] sm:$0xff]  ;;  %v664_v13 = vpack.c.bf16 %v33_v11, %v32_v10  ;;  %v53_v15 = vld [vmem:[%s955_s2 + $0x8] sm:$0xff]  ;;  %72 = vperm.xlu1 %727, %v54_v14   ;;  %v55_v16 = vld [vmem:[%s955_s2 + $0x18] sm:$0xff] }
   0x5   :  { %657 = vmatpush3.bf16.xpose.msk.msra.mxu0 %vm780_vm1, %v652_v5  ;;  %62 = vperm.xlu0 %726, %v52_v12   ;;  %v34_v17 = vld [vmem:[%s952_s0 + $0x30] sm:$0xff]  ;;  %v35_v18 = vld [vmem:[%s952_s0 + $0x38] sm:$0xff]  ;;  %v56_v19 = vld [vmem:[%s955_s2 + $0x20] sm:$0xff] }
   0x6   :  { %660 = vmatprep.subr.msk.bf16.mxu0 %vm780_vm1, %v658_v8  ;;  %v57_v20 = vld [vmem:[%s955_s2 + $0x28] sm:$0xff]  ;;  %v670_v21 = vpack.c.bf16 %v35_v18, %v34_v17  ;;  %v58_v22 = vld [vmem:[%s955_s2 + $0x30] sm:$0xff]  ;;  %v59_v23 = vld [vmem:[%s955_s2 + $0x38] sm:$0xff] }
   0x7   :  { %v36_v24 = vld [vmem:[%s952_s0 + $0x40] sm:$0xff]  ;;  %v37_v25 = vld [vmem:[%s952_s0 + $0x48] sm:$0xff]  ;;  %v292_v29 = vld [vmem:[%s956_s4 + $0x10] sm:$0xff] }
   0x8   :  { %77 = vperm.xlu1 %727, %v55_v16   ;;  %v290_v26 = vld [vmem:[%s956_s4] sm:$0xff]  ;;  %v291_v27 = vld [vmem:[%s956_s4 + $0x8] sm:$0xff]  ;;  %v676_v28 = vpack.c.bf16 %v37_v25, %v36_v24  ;;  %v293_v30 = vld [vmem:[%s956_s4 + $0x18] sm:$0xff]  ;;  %v729_v24 = vmov 0.0|0.0   ;;  %v731_v25 = vmov 0.0  }
   0x9   :  { %67 = vperm.xlu0 %726, %v53_v15   ;;  %v38_v31 = vld [vmem:[%s952_s0 + $0x50] sm:$0xff]  ;;  %v39_v32 = vld [vmem:[%s952_s0 + $0x58] sm:$0xff]  ;;  %v417_v33 = vld [vmem:[#allocation2] sm:$0x1] }
   0xa   :  { %v682_v34 = vpack.c.bf16 %v39_v32, %v38_v31  ;;  %v40_v35 = vld [vmem:[%s952_s0 + $0x60] sm:$0xff]  ;;  %v41_v36 = vld [vmem:[%s952_s0 + $0x68] sm:$0xff]  ;;  %v42_v38 = vld [vmem:[%s952_s0 + $0x70] sm:$0xff] }
   0xb   :  { %v688_v37 = vpack.c.bf16 %v41_v36, %v40_v35  ;;  %v43_v39 = vld [vmem:[%s952_s0 + $0x78] sm:$0xff]  ;;  %v45_v41 = vld [vmem:[%s954_s1 + $0x8] sm:$0xff]  ;;  %v46_v42 = vld [vmem:[%s954_s1 + $0x10] sm:$0xff] }
   0xc   :  { %87 = vperm.xlu1 %727, %v57_v20   ;;  %v694_v40 = vpack.c.bf16 %v43_v39, %v42_v38  ;;  %v47_v43 = vld [vmem:[%s954_s1 + $0x18] sm:$0xff]  ;;  %v48_v44 = vld [vmem:[%s954_s1 + $0x20] sm:$0xff]  ;;  %v49_v45 = vld [vmem:[%s954_s1 + $0x28] sm:$0xff] }
   0xd   :  { %663 = vmatpush3.bf16.xpose.msk.msra.mxu0 %vm780_vm1, %v658_v8  ;;  %82 = vperm.xlu0 %726, %v56_v19   ;;  %v50_v46 = vld [vmem:[%s954_s1 + $0x30] sm:$0xff]  ;;  %v51_v47 = vld [vmem:[%s954_s1 + $0x38] sm:$0xff]  ;;  %v286_v48 = vld [vmem:[%s957_s3] sm:$0xff] }
   0xe   :  { %666 = vmatprep.subr.msk.bf16.mxu0 %vm780_vm1, %v664_v13  ;;  %635 = vmatprep.mubr.msk.f32.mxu1 %vm314_vm2, %v286_v48 }
  0x10   :  { %97 = vperm.xlu1 %727, %v59_v23   ;;  %v289_v23 = vld [vmem:[%s957_s3 + $0x18] sm:$0xff] }
  0x11   :  { %92 = vperm.xlu0 %726, %v58_v22   ;;  %v288_v22 = vld [vmem:[%s957_s3 + $0x10] sm:$0xff] }
  0x14   :  { %301 = vperm.xlu1 %727, %v291_v27  }
  0x15   :  { %669 = vmatpush3.bf16.xpose.msk.msra.mxu0 %vm780_vm1, %v664_v13  ;;  %296 = vperm.xlu0 %726, %v290_v26  }
  0x16   :  { %672 = vmatprep.subr.msk.bf16.mxu0 %vm780_vm1, %v670_v21 }
  0x18   :  { %311 = vperm.xlu1 %727, %v293_v30  }
  0x19   :  { %306 = vperm.xlu0 %726, %v292_v29  }
  0x1d   :  { %675 = vmatpush3.bf16.xpose.msk.msra.mxu0 %vm780_vm1, %v670_v21  ;;  %420 = vperm.xlu0 %726, %v417_v33   ;;  %v287_v21 = vld [vmem:[%s957_s3 + $0x8] sm:$0xff] }
  0x1e   :  { %678 = vmatprep.subr.msk.bf16.mxu0 %vm780_vm1, %v676_v28 }
  0x25   :  { %681 = vmatpush3.bf16.xpose.msk.msra.mxu0 %vm780_vm1, %v676_v28 }
  0x26   :  { %684 = vmatprep.subr.msk.bf16.mxu0 %vm780_vm1, %v682_v34 }
  0x2d   :  { %687 = vmatpush3.bf16.xpose.msk.msra.mxu0 %vm780_vm1, %v682_v34 }
  0x2e   :  { %690 = vmatprep.subr.msk.bf16.mxu0 %vm780_vm1, %v688_v37 }
  0x35   :  { %693 = vmatpush3.bf16.xpose.msk.msra.mxu0 %vm780_vm1, %v688_v37 }
  0x36   :  { %696 = vmatprep.subr.msk.bf16.mxu0 %vm780_vm1, %v694_v40 }
  0x3d   :  { %699 = vmatpush3.bf16.xpose.msk.msra.mxu0 %vm780_vm1, %v694_v40 }
  0x44   :  { %608 = vmatmul.mubr.msk.f32.vlgmr.msra.gmra.mrb[0].mxu0 %vm100_vm0, %v45_v41 }
  0x45   :  { %610 = vmatprep.mubr.msk.f32.mxu0 %vm100_vm0, %v46_v42 }
  0x48   :  { %611 = vmatmul.mubr.msk.f32.gmra.mrb[2].mxu0 %vm100_vm0, %v47_v43 }
  0x49   :  { %613 = vmatprep.mubr.msk.f32.mxu0 %vm100_vm0, %v48_v44  ;;  %v416_v44 = vld [vmem:[%s958_s5] sm:$0x1] }
  0x4c   :  { %614 = vmatmul.mubr.msk.f32.gmra.mrb[4].mxu0 %vm100_vm0, %v49_v45  ;;  %v423_v45 = vlaneseq }
  0x4d   :  { %616 = vmatprep.mubr.msk.f32.mxu0 %vm100_vm0, %v50_v46 }
  0x4e   :  { %v424_v46 = vshrl.u32 %v423_v45, 7 }
  0x50   :  { %617 = vmatmul.mubr.msk.f32.gmra.mrb[6].mxu0 %vm100_vm0, %v51_v47  ;;  %v425_v47 = vsub.s32 0, %v424_v46 }
  0x83   :  { %v73_v50 = vpop.permute.xlu1 %72 }
  0x84   :  { %v63_v49 = vpop.permute.xlu0 %62 }
  0x87   :  { %v78_v52 = vpop.permute.xlu1 %77 }
  0x88   :  { %v68_v51 = vpop.permute.xlu0 %67 }
  0x8b   :  { %v88_v62 = vpop.permute.xlu1 %87 }
  0x8c   :  { %v83_v1 = vpop.permute.xlu0 %82 }
  0x8f   :  { %v98_v10 = vpop.permute.xlu1 %97 }
  0x90   :  { %v93_v13 = vpop.permute.xlu0 %92 }
  0x93   :  { %v302_v26 = vpop.permute.xlu1 %301 }
  0x94   :  { %v297_v27 = vpop.permute.xlu0 %296 }
  0x97   :  { %v312_v33 = vpop.permute.xlu1 %311 }
  0x98   :  { %v307_v36 = vpop.permute.xlu0 %306 }
  0x9c   :  { %v421_v48 = vpop.permute.xlu0 %420 }
 0x117   :  { %v609_v53 = vpop.f32.mrb[0].mxu0 }
 0x118   :  { %v245_v54 = vadd.f32 %v609_v53, %v68_v51  ;;  %v239_v55 = vpop.f32.mrb[1].mxu0 }
 0x119   :  { %v240_v56 = vadd.f32 %v239_v55, %v63_v49  ;;  %v426_v49 = vrot.slane %v421_v48, %v425_v47 }
 0x11a   :  { %v279_v57 = vmax.f32 %v245_v54, 0.0 }
 0x11b   :  { %v278_v58 = vmax.f32 %v240_v56, 0.0  ;;  %v612_v59 = vpop.f32.mrb[2].mxu0 }
 0x11c   :  { %v255_v60 = vadd.f32 %v612_v59, %v78_v52  ;;  %v249_v61 = vpop.f32.mrb[3].mxu0 }
 0x11d   :  { %v250_v63 = vadd.f32 %v249_v61, %v73_v50  ;;  %v700_v0 = vpack.c.bf16 %v279_v57, %v278_v58 }
 0x11e   :  { %v281_v2 = vmax.f32 %v255_v60, 0.0 }
 0x11f   :  { %v280_v3 = vmax.f32 %v250_v63, 0.0  ;;  %v615_v4 = vpop.f32.mrb[4].mxu0  ;;  %701 = vmatprep.subr.bf16.mxu1 %v700_v0 }
 0x120   :  { %v265_v5 = vadd.f32 %v615_v4, %v88_v62  ;;  %v259_v6 = vpop.f32.mrb[5].mxu0  ;;  %703 = vmatpush3.bf16.msra.mxu1 %v700_v0 }
 0x121   :  { %v704_v7 = vpack.c.bf16 %v281_v2, %v280_v3  ;;  %v260_v8 = vadd.f32 %v259_v6, %v83_v1 }
 0x122   :  { %v283_v9 = vmax.f32 %v265_v5, 0.0 }
 0x123   :  { %v282_v11 = vmax.f32 %v260_v8, 0.0  ;;  %v618_v12 = vpop.f32.mrb[6].mxu0  ;;  %705 = vmatprep.subr.bf16.mxu1 %v704_v7 }
 0x124   :  { %v275_v14 = vadd.f32 %v618_v12, %v98_v10  ;;  %v269_v15 = vpop.f32.mrb[7].mxu0  ;;  %707 = vmatpush3.bf16.msra.mxu1 %v704_v7 }
 0x125   :  { %v708_v16 = vpack.c.bf16 %v283_v9, %v282_v11  ;;  %v270_v17 = vadd.f32 %v269_v15, %v93_v13 }
 0x126   :  { %v285_v18 = vmax.f32 %v275_v14, 0.0 }
 0x127   :  { %v284_v19 = vmax.f32 %v270_v17, 0.0  ;;  %709 = vmatprep.subr.bf16.mxu1 %v708_v16 }
 0x128   :  { %711 = vmatpush3.bf16.msra.mxu1 %v708_v16 }
 0x129   :  { %v712_v20 = vpack.c.bf16 %v285_v18, %v284_v19 }
 0x12b   :  { %713 = vmatprep.subr.bf16.mxu1 %v712_v20 }
 0x12c   :  { %715 = vmatpush3.bf16.msra.mxu1 %v712_v20 }
 0x12d   :  { %716 = vmatprep.subr.bf16.mxu1 %v729_v24 }
 0x12f   :  { %636 = vmatmul.mubr.msk.f32.vlgmr.msra.gmra.mrb[0].mxu1 %vm314_vm2, %v287_v21 }
 0x130   :  { %638 = vmatprep.mubr.msk.f32.mxu1 %vm314_vm2, %v288_v22 }
 0x133   :  { %639 = vmatmul.mubr.msk.f32.gmra.mrb[2].mxu1 %vm314_vm2, %v289_v23 }
 0x134   :  { %649 = vmatprep.mubr.msk.f32.mxu1 %vm730_vm3, %v731_v25 }
 0x202   :  { %v637_v28 = vpop.f32.mrb[0].mxu1 }
 0x203   :  { %v399_v29 = vadd.f32 %v637_v28, %v302_v26  ;;  %v393_v30 = vpop.f32.mrb[1].mxu1 }
 0x204   :  { %v394_v31 = vadd.f32 %v393_v30, %v297_v27 }
 0x205   :  { %v413_v32 = vmax.f32 %v399_v29, 0.0 }
 0x206   :  { %v412_v34 = vmax.f32 %v394_v31, 0.0  ;;  %v640_v35 = vpop.f32.mrb[2].mxu1 }
 0x207   :  { %v409_v37 = vadd.f32 %v640_v35, %v312_v33  ;;  %v403_v38 = vpop.f32.mrb[3].mxu1 }
 0x208   :  { %v717_v39 = vpack.c.bf16 %v413_v32, %v412_v34  ;;  %v404_v40 = vadd.f32 %v403_v38, %v307_v36 }
 0x209   :  { %v415_v41 = vmax.f32 %v409_v37, 0.0 }
 0x20a   :  { %v414_v42 = vmax.f32 %v404_v40, 0.0  ;;  %718 = vmatpush3.bf16.msra.mxu1 %v717_v39 }
 0x20b   :  { %719 = vmatprep.subr.bf16.mxu1 %v729_v24 }
 0x20c   :  { %v720_v43 = vpack.c.bf16 %v415_v41, %v414_v42 }
 0x20e   :  { %721 = vmatpush3.bf16.msra.mxu1 %v720_v43 }
 0x211   :  { %650 = vmatmul.mubr.msk.f32.vlgmr.msra.gmra.mrb[4].mxu1 %vm100_vm0, %v416_v44 }
 0x2e4   :  { %v496_v50 = vpop.f32.mrb[4].mxu1 }
 0x2e5   :  { %v497_v51 = vadd.f32 %v496_v50, %v426_v49  ;;  %v651_v52 = vpop.f32.mrb[5].mxu1 }
 0x2e7   :  { %500 = vst [vmem:[%s959_s7] sm:$0x1] %v497_v51 }

</bundles_post_ra>
